<compile_context>
chip_gen: v5e
topology: v5e:2x2
jax: 0.10.0
libtpu: 0.0.40
codegen_flags: <defaults>
</compile_context>

<pallas_src>
import math

import jax
import jax.numpy as jnp
from jax.experimental import pallas as pl
from jax.experimental.pallas import tpu as pltpu


def _round_up(x, m):
    return ((x + m - 1) // m) * m


def _linear_kernel(x_ref, w_ref, b_ref, o_ref):
    # x_ref: (TB, F) streamed batch tile, w_ref: (F, C) resident weight,
    # b_ref: (1, C) resident bias, o_ref: (TB, C) output tile.
    acc = jnp.dot(x_ref[...], w_ref[...], preferred_element_type=jnp.float32)
    o_ref[...] = (acc + b_ref[...]).astype(o_ref.dtype)


def prepare_linear_params(weight, bias):
    """One-time parameter prep (do NOT run per forward call).

    Takes PyTorch-convention weight (num_classes, feature_dim) and bias
    (num_classes,), returns:
      w_t: (F, C) pre-transposed weight
      b2d: (1, C) bias
    No padding: full-extent BlockSpec dims let Mosaic pad the contraction /
    lane dims internally at zero HBM cost, and the output is produced at its
    true width.
    """
    w_t = jnp.asarray(weight).T                  # (F, C)
    b2d = jnp.asarray(bias).reshape(1, -1)       # (1, C)
    return w_t, b2d


def _choose_batch_tile(B, F):
    """Pick the batch tile size (multiple of 8 sublanes).

    Targets a ~4 MiB streamed (TB, F) f32 tile: big enough to amortize the
    ~0.35 us per-grid-step pipeline overhead, small enough that the two
    double-buffered x tiles + output tiles fit comfortably in every
    generation's VMEM (incl. v7x's 64 MiB per TC).  Never larger than the
    (rounded-up) batch; batches that would fit in one tile are split in two
    so v7x's two TensorCores both get work on the "parallel" batch axis.
    """
    target_bytes = 4 * 1024 * 1024
    tb = target_bytes // (4 * max(F, 1))
    tb = max(256, min(4096, tb))
    tb = _round_up(tb, 8)
    b8 = _round_up(B, 8)
    if b8 >= 16 and tb >= b8:
        tb = _round_up(pl.cdiv(b8, 2), 8)
    return max(8, min(tb, b8))


@jax.jit
def logistic_regression_forward(x, w_t, b2d):
    """Forward pass of LogisticRegression (a single nn.Linear).

    Args:
      x:   (B, feature_dim) float32
      w_t: (feature_dim, num_classes) prepared weight
      b2d: (1, num_classes) prepared bias
    Returns:
      (B, num_classes) float32, identical to PyTorch nn.Linear output.
    """
    B, F = x.shape
    F2, C = w_t.shape
    assert F == F2, "feature_dim mismatch between x and prepared weight"

    TB = _choose_batch_tile(B, F)
    grid = (pl.cdiv(B, TB),)

    # VMEM budget: 2x streamed x tiles + 2x output tiles + single-buffered
    # weight/bias + headroom.  Raise above the small v5e default (16 MiB),
    # but never past 48 MiB so we stay inside v7x's 64 MiB per-TC VMEM.
    vmem_needed = 4 * (2 * TB * F + 2 * TB * C + F * C + C) + (2 << 20)
    vmem_limit = int(min(48 * 1024 * 1024, max(32 * 1024 * 1024, vmem_needed)))

    cost = pl.CostEstimate(
        flops=2 * B * F * C,
        bytes_accessed=4 * (B * F + F * C + B * C + C),
        transcendentals=0,
    )

    return pl.pallas_call(
        _linear_kernel,
        out_shape=jax.ShapeDtypeStruct((B, C), x.dtype),
        grid_spec=pltpu.PrefetchScalarGridSpec(
            num_scalar_prefetch=0,
            grid=grid,
            in_specs=[
                # Streamed x batch tile (ragged last block masked by Pallas).
                pl.BlockSpec((TB, F), lambda i: (i, 0)),
                # Resident weight: constant index map -> single-buffered.
                pl.BlockSpec((F, C), lambda i: (0, 0),
                             pipeline_mode=pl.Buffered(1)),
                # Resident bias: constant index map -> single-buffered.
                pl.BlockSpec((1, C), lambda i: (0, 0),
                             pipeline_mode=pl.Buffered(1)),
            ],
            out_specs=pl.BlockSpec((TB, C), lambda i: (i, 0)),
        ),
        compiler_params=pltpu.CompilerParams(
            dimension_semantics=("parallel",),
            vmem_limit_bytes=vmem_limit,
        ),
        cost_estimate=cost,
    )(x, w_t, b2d)


def init_linear_params(key, feature_dim, num_classes):
    """Deterministic init mirroring torch.nn.Linear defaults
    (uniform(-1/sqrt(fan_in), 1/sqrt(fan_in)) for both weight and bias)."""
    k_w, k_b = jax.random.split(key)
    bound = 1.0 / math.sqrt(feature_dim)
    weight = jax.random.uniform(
        k_w, (num_classes, feature_dim), jnp.float32, -bound, bound)
    bias = jax.random.uniform(
        k_b, (num_classes,), jnp.float32, -bound, bound)
    return weight, bias


if __name__ == "__main__":
    key = jax.random.PRNGKey(0)
    k_x, k_p = jax.random.split(key)

    batch = 8
    feature_dim = 32     # "feature_dim" of the module
    num_classes = 8      # "num_classes" of the module

    x = jax.random.normal(k_x, (batch, feature_dim), jnp.float32)
    weight, bias = init_linear_params(k_p, feature_dim, num_classes)

    # One-time parameter prep (transpose + reshape) — off the hot path.
    w_t, b2d = prepare_linear_params(weight, bias)

    y = logistic_regression_forward(x, w_t, b2d)
    y = jax.block_until_ready(y)

    # Sanity check against plain-JAX reference of nn.Linear.
    y_ref = x @ weight.T + bias
    assert y.shape == (batch, num_classes)
    assert jnp.allclose(y, y_ref, atol=1e-5, rtol=1e-5)

    print("KERNEL_OK")
</pallas_src>

<mosaic_0001>
module attributes {stable_mosaic.version = 11 : i64} {
  func.func @_linear_kernel(%arg0: i32, %arg1: memref<8x32xf32, #tpu.memory_space<vmem>>, %arg2: memref<32x8xf32, #tpu.memory_space<vmem>>, %arg3: memref<1x8xf32, #tpu.memory_space<vmem>>, %arg4: memref<8x8xf32, #tpu.memory_space<vmem>>) attributes {dimension_semantics = [#tpu.dimension_semantics<parallel>], iteration_bounds = array<i64: 1>, scalar_prefetch = 0 : i64, scratch_operands = 0 : i64, tpu.core_type = #tpu.core_type<tc>, window_params = [{transform_indices = @transform_0, window_bounds = array<i64: 8, 32>}, {pipeline_mode = #tpu.pipeline_mode<synchronous>, transform_indices = @transform_1, window_bounds = array<i64: 32, 8>}, {pipeline_mode = #tpu.pipeline_mode<synchronous>, transform_indices = @transform_2, window_bounds = array<i64: 1, 8>}, {transform_indices = @transform_3, window_bounds = array<i64: 8, 8>}]} {
    %c0 = arith.constant 0 : index
    %c0_0 = arith.constant 0 : index
    %0 = vector.load %arg1[%c0, %c0_0] : memref<8x32xf32, #tpu.memory_space<vmem>>, vector<8x32xf32>
    %c0_1 = arith.constant 0 : index
    %c0_2 = arith.constant 0 : index
    %1 = vector.load %arg2[%c0_1, %c0_2] : memref<32x8xf32, #tpu.memory_space<vmem>>, vector<32x8xf32>
    %cst = arith.constant dense<0.000000e+00> : vector<8x8xf32>
    %2 = tpu.matmul %0, %1, %cst {dimension_numbers = #tpu.dot_dimension_numbers<[1], [0], [0], [1], [0, 0, 1, 1], [], []>} : vector<8x32xf32>, vector<32x8xf32>, vector<8x8xf32> -> vector<8x8xf32>
    %c0_3 = arith.constant 0 : index
    %c0_4 = arith.constant 0 : index
    %3 = vector.load %arg3[%c0_3, %c0_4] : memref<1x8xf32, #tpu.memory_space<vmem>>, vector<1x8xf32>
    %4 = vector.broadcast %3 : vector<1x8xf32> to vector<8x8xf32>
    %5 = arith.addf %2, %4 : vector<8x8xf32>
    %c0_5 = arith.constant 0 : index
    %c0_6 = arith.constant 0 : index
    %6 = vector.load %arg4[%c0_5, %c0_6] : memref<8x8xf32, #tpu.memory_space<vmem>>, vector<8x8xf32>
    tpu.vector_store %arg4[%c0_5, %c0_6], %5 {strides = array<i32>} : memref<8x8xf32, #tpu.memory_space<vmem>>, vector<8x8xf32>,
    return
  }
  func.func @transform_0(%arg0: i32) -> (i32, i32) {
    %c0_i32 = arith.constant 0 : i32
    %c0_i32_0 = arith.constant 0 : i32
    return %arg0, %c0_i32 : i32, i32
  }
  func.func @transform_1(%arg0: i32) -> (i32, i32) {
    %c0_i32 = arith.constant 0 : i32
    %c0_i32_0 = arith.constant 0 : i32
    %c0_i32_1 = arith.constant 0 : i32
    return %c0_i32, %c0_i32_0 : i32, i32
  }
  func.func @transform_2(%arg0: i32) -> (i32, i32) {
    %c0_i32 = arith.constant 0 : i32
    %c0_i32_0 = arith.constant 0 : i32
    %c0_i32_1 = arith.constant 0 : i32
    return %c0_i32, %c0_i32_0 : i32, i32
  }
  func.func @transform_3(%arg0: i32) -> (i32, i32) {
    %c0_i32 = arith.constant 0 : i32
    %c0_i32_0 = arith.constant 0 : i32
    return %arg0, %c0_i32 : i32, i32
  }
}

</mosaic_0001>

<bundles_post_ra>
// kernel: logistic_regression_forward.1
= control target key start
LH: loop header
LB: loop body
LE: loop exit
PB: predicated region body
PF: predicated region fallthrough
CT: control target
= control target key end

     0   :  { %s137_s0 = inlined_call_operand.vmem [shape: f32[8,32], index: 0, kind: input, shape index: {}]   ;;  %s138_s1 = inlined_call_operand.vmem [shape: f32[32,8], index: 1, kind: input, shape index: {}]   ;;  %s139_s2 = inlined_call_operand.vmem [shape: f32[1,8], index: 2, kind: input, shape index: {}]   ;;  %s140_s3 = inlined_call_operand.hbm [shape: f32[8,8], index: 3, kind: output, shape index: {}]  }
   0x1   :  { %v19_v0 = vld [vmem:[%s138_s1 + $0x18] sm:$0xff]  ;;  %v18_v1 = vld [vmem:[%s138_s1 + $0x10] sm:$0xff]  ;;  %v17_v2 = vld [vmem:[%s138_s1 + $0x8] sm:$0xff] }
   0x2   :  { %40 = vmatpush.msra.mxu0 %v19_v0 }
   0x3   :  { %8 = vsyncpa [#allocation3], 0  ;;  %v16_v3 = vld [vmem:[%s138_s1] sm:$0xff]  ;;  %vm24_vm0 = vcmask 261120   ;;  %s95_s24 = smov [#allocation2]   ;;  %s57_s28 = sshll.u32 %s140_s3, 4  ;;  %s58_s28 = int_to_ptr.hbm [resolvable:$true] %s57_s28 }
   0x4   :  { %41 = vmatpush.msra.mxu0 %v18_v1  ;;  %v15_v4 = vld [vmem:[%s137_s0] sm:$0xff]  ;;  %s55_s25 = sshll.u32 %s95_s24, 4  ;;  %vm48_vm1 = vcmask 64512   ;;  %s56_s25 = int_to_ptr.vmem [resolvable:$true] %s55_s25 }
   0x5   :  { %v68_v5 = vld [vmem:[%s139_s2] ss:$0 sm:$0xff] }
   0x6   :  { %42 = vmatpush.msra.mxu0 %v17_v2 }
   0x8   :  { %43 = vmatpush.msra.mxu0 %v16_v3 }
   0x9   :  { %66 = vmatmul.msk.f32.vlgmr.msra.gmra.mxu0 %vm24_vm0, %v15_v4 }
  0x86   :  { %v45_v6 = vpop.f32.mrf.mxu0 }
  0x87   :  { %v46_v7 = vadd.f32 %v68_v5, %v45_v6 }
  0x89   :  { %49 = vst.msk [vmem:[#allocation2] sm:$0xff] %vm48_vm1, %v46_v7 }
  0x8a   :  { %60 = dma.vmem_to_hbm [thread:$0]  %s56_s25, 128, %s58_s28, [#allocation3]  }
  0x8b   :  { %93 = dma.done.wait [#allocation3], 128  }
  0x8c   :  { %94 = vsyncadd [#allocation3], 4294967168 }
  0x8d   :  { %65 = vsyncpa [#allocation3], 1 }

</bundles_post_ra>
